<compile_context>
chip_gen: v7x
topology: tpu7x:2x2x1
jax: 0.10.0
libtpu: 0.0.40
codegen_flags: <defaults>
</compile_context>

<pallas_src>
import math

import jax
import jax.numpy as jnp
from jax.experimental import pallas as pl
from jax.experimental.pallas import tpu as pltpu

_LANE = 128                              # vreg lane width
_SUB = 8                                 # f32 sublane count
_TARGET_BLOCK_BYTES = 2 * 1024 * 1024    # ~2 MiB per x/out block (good on v5e..v7x)
_MIN_PALLAS_BYTES = 256 * 1024           # below this, plain jnp is cheaper (dispatch cost)


def _round_up(n, m):
    return (n + m - 1) // m * m


def _norm_kernel(x_ref, mean_ref, scale_ref, o_ref):
    # Upcast in-register; stats broadcast over the leading (batch) block dims.
    x = x_ref[...].astype(jnp.float32)
    o_ref[...] = ((x - mean_ref[...]) * scale_ref[...]).astype(o_ref.dtype)


def _normalize_dense(x, mean, scale, b, r, out_dtype, target_block_bytes):
    """F % 128 == 0 path: view x as (B, R, 128), stats as (R, 128)."""
    x3 = x.reshape(b, r, _LANE)                 # contiguous -> free view
    m2 = mean.reshape(r, _LANE)
    s2 = scale.reshape(r, _LANE)

    itemsize = max(x.dtype.itemsize, jnp.dtype(out_dtype).itemsize)
    row_bytes = _LANE * itemsize

    # Feature tile: multiple of 8 sublanes (or the full extent), sized to target.
    tr = max(_SUB, (target_block_bytes // row_bytes) // _SUB * _SUB)
    if tr >= r:
        tr = r                                   # full extent satisfies (8,128) rule
    nj = pl.cdiv(r, tr)

    # Batch tile: grow block toward target when the feature extent is small.
    tb = min(b, max(1, target_block_bytes // (tr * row_bytes)))
    ni = pl.cdiv(b, tb)

    # Megacore: shard the axis with real extent; keep the stats-invariant
    # (batch) axis sequential per core when feature blocks > 1 so the
    # mean/scale DMA is skipped across batch iterations.
    dims = ("parallel", "arbitrary") if nj > 1 else ("arbitrary", "parallel")

    x_blk = tb * tr * _LANE * x.dtype.itemsize
    o_blk = tb * tr * _LANE * jnp.dtype(out_dtype).itemsize
    s_blk = 2 * tr * _LANE * 4
    vmem_limit = int(min(2 * (x_blk + o_blk + s_blk) + (8 << 20), 48 << 20))

    out = pl.pallas_call(
        _norm_kernel,
        out_shape=jax.ShapeDtypeStruct((b, r, _LANE), out_dtype),
        grid_spec=pltpu.PrefetchScalarGridSpec(
            num_scalar_prefetch=0,
            grid=(nj, ni),                       # feature outer, batch inner
            in_specs=[
                pl.BlockSpec((tb, tr, _LANE), lambda j, i: (i, j, 0)),
                pl.BlockSpec((tr, _LANE), lambda j, i: (j, 0)),   # stats: i-invariant
                pl.BlockSpec((tr, _LANE), lambda j, i: (j, 0)),
            ],
            out_specs=pl.BlockSpec((tb, tr, _LANE), lambda j, i: (i, j, 0)),
        ),
        compiler_params=pltpu.CompilerParams(
            dimension_semantics=dims,
            vmem_limit_bytes=vmem_limit,
        ),
    )(x3, m2, s2)
    return out


def _normalize_ragged(x, mean, scale, b, f, out_dtype, target_block_bytes):
    """F % 128 != 0 fallback: (B, F) blocks; Pallas masks the ragged blocks."""
    # TODO(synk): for large ragged tensors, split into a 128-aligned main part
    # (dense path) plus a tiny jnp tail to keep full vreg/store occupancy.
    x2 = x.reshape(b, f)
    m2 = mean.reshape(1, f)
    s2 = scale.reshape(1, f)

    itemsize = max(x.dtype.itemsize, jnp.dtype(out_dtype).itemsize)

    # Batch tile: full dim for small B (always legal), else a multiple of 8.
    tb = b if b <= 64 else 64
    tf = (target_block_bytes // max(1, tb * itemsize)) // _LANE * _LANE
    tf = max(_LANE, min(tf, _round_up(f, _LANE)))
    nj = pl.cdiv(f, tf)
    ni = pl.cdiv(b, tb)

    dims = ("parallel", "arbitrary") if nj > 1 else ("arbitrary", "parallel")

    x_blk = tb * tf * x.dtype.itemsize
    o_blk = tb * tf * jnp.dtype(out_dtype).itemsize
    s_blk = 2 * tf * 4
    vmem_limit = int(min(2 * (x_blk + o_blk + s_blk) + (8 << 20), 48 << 20))

    out = pl.pallas_call(
        _norm_kernel,
        out_shape=jax.ShapeDtypeStruct((b, f), out_dtype),
        grid_spec=pltpu.PrefetchScalarGridSpec(
            num_scalar_prefetch=0,
            grid=(nj, ni),                       # feature outer, batch inner
            in_specs=[
                pl.BlockSpec((tb, tf), lambda j, i: (i, j)),
                pl.BlockSpec((1, tf), lambda j, i: (0, j)),       # stats: i-invariant
                pl.BlockSpec((1, tf), lambda j, i: (0, j)),
            ],
            out_specs=pl.BlockSpec((tb, tf), lambda j, i: (i, j)),
        ),
        compiler_params=pltpu.CompilerParams(
            dimension_semantics=dims,
            vmem_limit_bytes=vmem_limit,
        ),
    )(x2, m2, s2)
    return out


def _normalize_one(x, mean, scale, *, target_block_bytes=_TARGET_BLOCK_BYTES):
    """x: (B, *dims); mean/scale: f32 with shape (*dims) (pre-folded)."""
    orig_shape = x.shape
    b = orig_shape[0]
    f = int(math.prod(orig_shape[1:])) if len(orig_shape) > 1 else 1
    out_dtype = jnp.promote_types(x.dtype, jnp.float32)   # PyTorch promotion vs f32 stats

    if f % _LANE == 0 and f > 0:
        out = _normalize_dense(x, mean, scale, b, f // _LANE, out_dtype,
                               target_block_bytes)
    else:
        out = _normalize_ragged(x, mean, scale, b, f, out_dtype,
                                target_block_bytes)
    return out.reshape(orig_shape)


def _normalize_jnp(x, mean, scale):
    out_dtype = jnp.promote_types(x.dtype, jnp.float32)
    return ((x.astype(jnp.float32) - mean) * scale).astype(out_dtype)


class ActivationNormalization:
    """JAX/Pallas port of the PyTorch module's forward (inference only)."""

    def __init__(self, means, variances, var_epsilon=0.001, norm_epsilon=0.1,
                 min_pallas_bytes=_MIN_PALLAS_BYTES):
        self.std_epsilon = float(var_epsilon)
        # Stored for parity with the PyTorch module; the reference forward never uses it.
        self.norm_epsilon = float(norm_epsilon)
        self.min_pallas_bytes = int(min_pallas_bytes)
        self.means = {k: jnp.asarray(v, dtype=jnp.float32) for k, v in means.items()}
        # Fold sqrt + eps + reciprocal into a single per-key scale, computed
        # once on the tiny statistics tensors (amortized across all calls).
        self.scales = {
            k: 1.0 / (jnp.sqrt(jnp.asarray(v, dtype=jnp.float32)) + self.std_epsilon)
            for k, v in variances.items()
        }

    def __call__(self, activations):
        # Mutates the dict in place and returns it, like the PyTorch forward.
        # TODO(synk): many small keys could be fused into a single pallas_call
        # via pl.ANY inputs + scalar-prefetched per-key offsets; not needed here.
        for key in list(activations.keys()):
            x = activations[key]
            mean, scale = self.means[key], self.scales[key]
            if x.size * x.dtype.itemsize < self.min_pallas_bytes:
                activations[key] = _normalize_jnp(x, mean, scale)   # XLA fuses tiny keys
            else:
                activations[key] = _normalize_one(x, mean, scale)
        return activations


if __name__ == "__main__":
    key = jax.random.PRNGKey(0)
    keys = jax.random.split(key, 16)

    acts = {
        "conv": jax.random.normal(keys[0], (2, 4, 16, 16), dtype=jnp.float32),
        "seq": jax.random.normal(keys[1], (2, 32, 8), dtype=jnp.float32),
        "ragged": jax.random.normal(keys[2], (2, 5, 6), dtype=jnp.float32),
        "conv_bf16": jax.random.normal(keys[3], (2, 4, 16, 16), dtype=jnp.bfloat16),
    }
    means = {
        "conv": jax.random.normal(keys[4], (4, 16, 16), dtype=jnp.float32),
        "seq": jax.random.normal(keys[5], (32, 8), dtype=jnp.float32),
        "ragged": jax.random.normal(keys[6], (5, 6), dtype=jnp.float32),
        "conv_bf16": jax.random.normal(keys[7], (4, 16, 16), dtype=jnp.float32),
    }
    variances = {
        "conv": jax.random.uniform(keys[8], (4, 16, 16), minval=0.1, maxval=2.0),
        "seq": jax.random.uniform(keys[9], (32, 8), minval=0.1, maxval=2.0),
        "ragged": jax.random.uniform(keys[10], (5, 6), minval=0.1, maxval=2.0),
        "conv_bf16": jax.random.uniform(keys[11], (4, 16, 16), minval=0.1, maxval=2.0),
    }

    # min_pallas_bytes=0 so the demo-sized tensors exercise the Pallas paths.
    module = ActivationNormalization(means, variances, min_pallas_bytes=0)
    out = module(dict(acts))
    out = jax.tree_util.tree_map(jax.block_until_ready, out)

    # Reference check (plain JAX, same math as the PyTorch forward).
    for k in acts:
        x32 = acts[k].astype(jnp.float32)
        ref = (x32 - means[k][None]) / (
            jnp.sqrt(variances[k])[None] + module.std_epsilon
        )
        assert out[k].shape == acts[k].shape
        # PyTorch promotion against f32 stats -> f32 outputs for all demo keys.
        assert out[k].dtype == jnp.float32
        assert jnp.allclose(out[k], ref, atol=1e-5, rtol=1e-5), k

    # Grid-stress checks: tiny target block forces multi-block grids so the
    # feature-outer / batch-inner index maps and stats residency are exercised.
    xd = jax.random.normal(keys[12], (3, 2048), dtype=jnp.float32)       # dense, nj=2, ni=3
    md = jax.random.normal(keys[13], (2048,), dtype=jnp.float32)
    vd = jax.random.uniform(keys[14], (2048,), minval=0.1, maxval=2.0)
    sd = 1.0 / (jnp.sqrt(vd) + module.std_epsilon)
    od = jax.block_until_ready(_normalize_one(xd, md, sd, target_block_bytes=4096))
    refd = (xd - md[None]) / (jnp.sqrt(vd)[None] + module.std_epsilon)
    assert jnp.allclose(od, refd, atol=1e-5, rtol=1e-5)

    xr = jax.random.normal(keys[15], (10, 300), dtype=jnp.float32)       # ragged, nj=3
    mr = jax.random.normal(keys[4], (300,), dtype=jnp.float32)
    vr = jax.random.uniform(keys[5], (300,), minval=0.1, maxval=2.0)
    sr = 1.0 / (jnp.sqrt(vr) + module.std_epsilon)
    orr = jax.block_until_ready(_normalize_one(xr, mr, sr, target_block_bytes=4096))
    refr = (xr - mr[None]) / (jnp.sqrt(vr)[None] + module.std_epsilon)
    assert jnp.allclose(orr, refr, atol=1e-5, rtol=1e-5)

    print("KERNEL_OK")
</pallas_src>

<mosaic_0001>
module attributes {stable_mosaic.version = 11 : i64} {
  func.func @_norm_kernel(%arg0: i32, %arg1: i32, %arg2: memref<2x8x128xf32, #tpu.memory_space<vmem>>, %arg3: memref<8x128xf32, #tpu.memory_space<vmem>>, %arg4: memref<8x128xf32, #tpu.memory_space<vmem>>, %arg5: memref<2x8x128xf32, #tpu.memory_space<vmem>>) attributes {dimension_semantics = [#tpu.dimension_semantics<arbitrary>, #tpu.dimension_semantics<parallel>], iteration_bounds = array<i64: 1, 1>, scalar_prefetch = 0 : i64, scratch_operands = 0 : i64, tpu.core_type = #tpu.core_type<tc>, window_params = [{transform_indices = @transform_0, window_bounds = array<i64: 2, 8, 128>}, {transform_indices = @transform_1, window_bounds = array<i64: 8, 128>}, {transform_indices = @transform_2, window_bounds = array<i64: 8, 128>}, {transform_indices = @transform_3, window_bounds = array<i64: 2, 8, 128>}]} {
    %c0 = arith.constant 0 : index
    %c0_0 = arith.constant 0 : index
    %c0_1 = arith.constant 0 : index
    %0 = vector.load %arg2[%c0, %c0_0, %c0_1] : memref<2x8x128xf32, #tpu.memory_space<vmem>>, vector<2x8x128xf32>
    %c0_2 = arith.constant 0 : index
    %c0_3 = arith.constant 0 : index
    %1 = vector.load %arg3[%c0_2, %c0_3] : memref<8x128xf32, #tpu.memory_space<vmem>>, vector<8x128xf32>
    %2 = vector.shape_cast %1 : vector<8x128xf32> to vector<1x8x128xf32>
    %3 = vector.broadcast %2 : vector<1x8x128xf32> to vector<2x8x128xf32>
    %4 = arith.subf %0, %3 : vector<2x8x128xf32>
    %c0_4 = arith.constant 0 : index
    %c0_5 = arith.constant 0 : index
    %5 = vector.load %arg4[%c0_4, %c0_5] : memref<8x128xf32, #tpu.memory_space<vmem>>, vector<8x128xf32>
    %6 = vector.shape_cast %5 : vector<8x128xf32> to vector<1x8x128xf32>
    %7 = vector.broadcast %6 : vector<1x8x128xf32> to vector<2x8x128xf32>
    %8 = arith.mulf %4, %7 : vector<2x8x128xf32>
    %c0_6 = arith.constant 0 : index
    %c0_7 = arith.constant 0 : index
    %c0_8 = arith.constant 0 : index
    %9 = vector.load %arg5[%c0_6, %c0_7, %c0_8] : memref<2x8x128xf32, #tpu.memory_space<vmem>>, vector<2x8x128xf32>
    tpu.vector_store %arg5[%c0_6, %c0_7, %c0_8], %8 {strides = array<i32>} : memref<2x8x128xf32, #tpu.memory_space<vmem>>, vector<2x8x128xf32>,
    return
  }
  func.func @transform_0(%arg0: i32, %arg1: i32) -> (i32, i32, i32) {
    %c0_i32 = arith.constant 0 : i32
    %c0_i32_0 = arith.constant 0 : i32
    return %arg1, %arg0, %c0_i32 : i32, i32, i32
  }
  func.func @transform_1(%arg0: i32, %arg1: i32) -> (i32, i32) {
    %c0_i32 = arith.constant 0 : i32
    %c0_i32_0 = arith.constant 0 : i32
    return %arg0, %c0_i32 : i32, i32
  }
  func.func @transform_2(%arg0: i32, %arg1: i32) -> (i32, i32) {
    %c0_i32 = arith.constant 0 : i32
    %c0_i32_0 = arith.constant 0 : i32
    return %arg0, %c0_i32 : i32, i32
  }
  func.func @transform_3(%arg0: i32, %arg1: i32) -> (i32, i32, i32) {
    %c0_i32 = arith.constant 0 : i32
    %c0_i32_0 = arith.constant 0 : i32
    return %arg1, %arg0, %c0_i32 : i32, i32, i32
  }
}

</mosaic_0001>

<bundles_post_ra>
// kernel: tpu_custom_call.1
= control target key start
LH: loop header
LB: loop body
LE: loop exit
PB: predicated region body
PF: predicated region fallthrough
CT: control target
= control target key end

     0   :  { %8 = vsyncpa [#allocation3], 0  ;;  %s267_s0 = inlined_call_operand.hbm [shape: f32[2,8,128], index: 0, kind: input, shape index: {}]   ;;  %s268_s1 = inlined_call_operand.hbm [shape: f32[8,128], index: 1, kind: input, shape index: {}]   ;;  %s269_s2 = inlined_call_operand.hbm [shape: f32[8,128], index: 2, kind: input, shape index: {}]   ;;  %s270_s3 = inlined_call_operand.hbm [shape: f32[2,8,128], index: 3, kind: output, shape index: {}]  }
   0x1   :  { %9 = vsyncpa [#allocation6], 0 }
   0x2   :  { %10 = vsyncpa [#allocation4], 0  ;;  %s180_s12 = smov [#allocation5]   ;;  %s181_s14 = smov [#allocation2]  }
   0x3   :  { %s29_s13 = sshll.u32 %s180_s12, 4  ;;  %s16_s15 = sshll.u32 %s181_s14, 4  ;;  %s30_s13 = int_to_ptr.vmem [resolvable:$true] %s29_s13  ;;  %s206_s15 = int_to_ptr.vmem [resolvable:$true] %s16_s15 }
   0x4   :  { %s86_s18 = scalar_lea.hbm %s268_s1, 128 }
   0x5   :  { %p87_p0 = scmp.ne.s32.totalorder %s268_s1, %s86_s18  ;;  %p90_p1 = scmp.lt.u32.totalorder %s86_s18, %s268_s1 }
   0x7   :  { %p92_p2 = pnand %p90_p1, %p87_p0 }
   0x9   :  { %95 = shalt.err (!%p92_p2)
}
   0xa   :  { %s96_s23 = scalar_lea.vmem %s30_s13, 128  ;;  %p101_p4 = scmp.lt.s32.totalorder %s30_s13, %s30_s13 }
   0xb   :  { %p97_p3 = scmp.ne.s32.totalorder %s30_s13, %s96_s23  ;;  %p102_p5 = scmp.lt.s32.totalorder %s96_s23, %s96_s23 }
   0xd   :  { %p103_p6 = por %p102_p5, %p101_p4 }
   0xf   :  { %p104_p7 = pnand %p103_p6, %p97_p3 }
  0x11   :  { %107 = shalt.err (!%p104_p7)
}
  0x12   :  { %32 = dma.hbm_to_vmem [thread:$0]  %s268_s1, 128, %s30_s13, [#allocation6]  }
  0x13   :  { %s108_s28 = scalar_lea.hbm %s267_s0, 256 }
  0x14   :  { %p109_p8 = scmp.ne.s32.totalorder %s267_s0, %s108_s28  ;;  %p112_p9 = scmp.lt.u32.totalorder %s108_s28, %s267_s0 }
  0x16   :  { %p114_p10 = pnand %p112_p9, %p109_p8 }
  0x18   :  { %117 = shalt.err (!%p114_p10)
}
  0x19   :  { %s118_s6 = scalar_lea.vmem %s206_s15, 256  ;;  %p123_p12 = scmp.lt.s32.totalorder %s206_s15, %s206_s15 }
  0x1a   :  { %p119_p11 = scmp.ne.s32.totalorder %s206_s15, %s118_s6  ;;  %p124_p13 = scmp.lt.s32.totalorder %s118_s6, %s118_s6 }
  0x1c   :  { %p125_p0 = por %p124_p13, %p123_p12 }
  0x1e   :  { %p126_p1 = pnand %p125_p0, %p119_p11 }
  0x20   :  { %129 = shalt.err (!%p126_p1)
}
  0x21   :  { %s182_s1 = smov 128   ;;  %s183_s7 = smov 8  }
  0x22   :  { %22 = dma.hbm_to_vmem [thread:$0]  %s267_s0, 256, %s206_s15, [#allocation3], %s182_s1, %s182_s1, %s183_s7  }
  0x23   :  { %s184_s10 = smov [#allocation7]   ;;  %s130_s14 = scalar_lea.hbm %s269_s2, 128 }
  0x24   :  { %s39_s11 = sshll.u32 %s184_s10, 4  ;;  %p131_p2 = scmp.ne.s32.totalorder %s269_s2, %s130_s14  ;;  %s40_s11 = int_to_ptr.vmem [resolvable:$true] %s39_s11 }
  0x25   :  { %p134_p3 = scmp.lt.u32.totalorder %s130_s14, %s269_s2 }
  0x27   :  { %p136_p4 = pnand %p134_p3, %p131_p2 }
  0x29   :  { %139 = shalt.err (!%p136_p4)
}
  0x2a   :  { %s140_s20 = scalar_lea.vmem %s40_s11, 128  ;;  %p145_p6 = scmp.lt.s32.totalorder %s40_s11, %s40_s11 }
  0x2b   :  { %p141_p5 = scmp.ne.s32.totalorder %s40_s11, %s140_s20  ;;  %p146_p7 = scmp.lt.s32.totalorder %s140_s20, %s140_s20 }
  0x2d   :  { %p147_p8 = por %p146_p7, %p145_p6 }
  0x2f   :  { %p148_p9 = pnand %p147_p8, %p141_p5 }
  0x31   :  { %151 = shalt.err (!%p148_p9)
}
  0x32   :  { %42 = dma.hbm_to_vmem [thread:$0]  %s269_s2, 128, %s40_s11, [#allocation6]  }
  0x33   :  { %174 = dma.done.wait [#allocation3], 256  }
  0x34   :  { %175 = vsyncadd [#allocation3], 4294967040 }
  0x35   :  { %176 = dma.done.wait [#allocation6], 256  }
  0x36   :  { %177 = vsyncadd [#allocation6], 4294967040  ;;  %v52_v0 = vld [vmem:[#allocation2] sm:$0xff]  ;;  %v54_v1 = vld [vmem:[#allocation5] sm:$0xff]  ;;  %s185_s21 = smov [#allocation8]  }
  0x37   :  { %v57_v2 = vld [vmem:[#allocation7] sm:$0xff]  ;;  %v55_v3 = vsub.f32 %v52_v0, %v54_v1  ;;  %v53_v4 = vld [vmem:[#allocation2 + $0x8] sm:$0xff]  ;;  %s67_s22 = sshll.u32 %s185_s21, 4  ;;  %s68_s22 = int_to_ptr.vmem [resolvable:$true] %s67_s22 }
  0x38   :  { %v56_v5 = vsub.f32 %v53_v4, %v54_v1  ;;  %s152_s23 = scalar_lea.vmem %s68_s22, 256  ;;  %p157_p11 = scmp.lt.s32.totalorder %s68_s22, %s68_s22 }
  0x39   :  { %v58_v6 = vmul.f32 %v57_v2, %v55_v3  ;;  %p153_p10 = scmp.ne.s32.totalorder %s68_s22, %s152_s23  ;;  %p158_p12 = scmp.lt.s32.totalorder %s152_s23, %s152_s23 }
  0x3a   :  { %v59_v7 = vmul.f32 %v57_v2, %v56_v5 }
  0x3b   :  { %60 = vst [vmem:[#allocation8] sm:$0xff] %v58_v6  ;;  %p159_p13 = por %p158_p12, %p157_p11 }
  0x3c   :  { %61 = vst [vmem:[#allocation8 + $0x8] sm:$0xff] %v59_v7 }
  0x3d   :  { %p160_p0 = pnand %p159_p13, %p153_p10 }
  0x3f   :  { %163 = shalt.err (!%p160_p0)
}
  0x40   :  { %s164_s25 = scalar_lea.hbm %s270_s3, 256 }
  0x41   :  { %p165_p1 = scmp.ne.s32.totalorder %s270_s3, %s164_s25  ;;  %p168_p2 = scmp.lt.u32.totalorder %s164_s25, %s270_s3 }
  0x43   :  { %p170_p3 = pnand %p168_p2, %p165_p1 }
  0x45   :  { %173 = shalt.err (!%p170_p3)
}
  0x46   :  { %73 = dma.vmem_to_hbm [thread:$0]  %s68_s22, 256, %s270_s3, [#allocation4], %s182_s1, %s182_s1, %s183_s7  }
  0x47   :  { %178 = dma.done.wait [#allocation4], 256  }
  0x48   :  { %179 = vsyncadd [#allocation4], 4294967040 }
  0x49   :  { %77 = vsyncpa [#allocation3], 1 }
  0x4a   :  { %78 = vsyncpa [#allocation6], 1 }
  0x4b   :  { %79 = vsyncpa [#allocation4], 1 }

</bundles_post_ra>
